<compile_context>
chip_gen: v5e
topology: v5e:2x2
jax: 0.10.0
libtpu: 0.0.40
codegen_flags: <defaults>
</compile_context>

<pallas_src>
import jax
import jax.numpy as jnp
from jax.experimental import pallas as pl
from jax.experimental.pallas import tpu as pltpu

# ----------------------------- config (MultiBoxLoss.__init__) ----------------
CFG = {"num_classes": 4, "variance": (0.1, 0.2)}
THRESHOLD = 0.5          # overlap_thresh
NEGPOS_RATIO = 3         # neg_pos
# loss_c='CrossEntropy', loss_r='SmoothL1' (module defaults).
# FocalLoss.alpha would be ones((num_classes, 1)); unused on the default path.

MAX_TP = 8192            # max lane-tile per grid step (128-multiple)


# ----------------------------- matching glue (plain JAX) ---------------------
def _point_form(boxes):
    return jnp.concatenate(
        [boxes[:, :2] - boxes[:, 2:] / 2.0, boxes[:, :2] + boxes[:, 2:] / 2.0],
        axis=1)


def _jaccard(box_a, box_b):
    max_xy = jnp.minimum(box_a[:, None, 2:], box_b[None, :, 2:])
    min_xy = jnp.maximum(box_a[:, None, :2], box_b[None, :, :2])
    inter_wh = jnp.clip(max_xy - min_xy, 0.0)
    inter = inter_wh[..., 0] * inter_wh[..., 1]
    area_a = ((box_a[:, 2] - box_a[:, 0]) * (box_a[:, 3] - box_a[:, 1]))[:, None]
    area_b = ((box_b[:, 2] - box_b[:, 0]) * (box_b[:, 3] - box_b[:, 1]))[None, :]
    return inter / (area_a + area_b - inter)


def _encode(matched, priors, variances):
    g_cxcy = (matched[:, :2] + matched[:, 2:]) / 2.0 - priors[:, :2]
    g_cxcy = g_cxcy / (variances[0] * priors[:, 2:])
    g_wh = (matched[:, 2:] - matched[:, :2]) / priors[:, 2:]
    g_wh = jnp.log(g_wh) / variances[1]
    return jnp.concatenate([g_cxcy, g_wh], axis=1)


def _match(threshold, truths, priors, variances, labels):
    overlaps = _jaccard(truths, _point_form(priors))     # [O, P]
    best_prior_idx = jnp.argmax(overlaps, axis=1)        # [O]
    best_truth_overlap = jnp.max(overlaps, axis=0)       # [P]
    best_truth_idx = jnp.argmax(overlaps, axis=0)        # [P]
    best_truth_overlap = best_truth_overlap.at[best_prior_idx].set(2.0)
    best_truth_idx = best_truth_idx.at[best_prior_idx].set(
        jnp.arange(truths.shape[0], dtype=jnp.int32))
    matched = truths[best_truth_idx]                     # [P, 4]
    conf = labels[best_truth_idx].astype(jnp.int32) + 1
    conf = jnp.where(best_truth_overlap < threshold, 0, conf)
    loc = _encode(matched, priors, variances)
    return loc.astype(jnp.float32), conf.astype(jnp.int32)


# ----------------------------- Pallas kernel ----------------------------------
def _ce_sl1_kernel(conf_ref, conft_ref, loc_ref, ce_ref, lossl_ref):
    """Per (batch, prior-tile): per-prior CE + positive Smooth-L1 partial sum.

    conf_ref : (1, C, TP) f32   logits, P on lanes
    conft_ref: (1, 1, TP) i32   matched labels
    loc_ref  : (1, 8, TP) f32   rows 0-3 predicted offsets, rows 4-7 targets
    ce_ref   : (1, 1, TP) f32   out: per-prior cross-entropy
    lossl_ref: (1, 1, 1)  f32   out: Smooth-L1 sum over positives in this tile
    """
    conf = conf_ref[...]                                        # (1, C, TP)
    labels = conft_ref[...]                                     # (1, 1, TP)

    # log-sum-exp over the class (sublane) axis, lane-dense in P.
    m = jnp.max(conf, axis=1, keepdims=True)                    # (1, 1, TP)
    lse = jnp.log(jnp.sum(jnp.exp(conf - m), axis=1, keepdims=True)) + m
    # gather conf[b, label, p] via class-plane compare/select (no [B,P,C] 1-hot)
    cls = jax.lax.broadcasted_iota(jnp.int32, conf.shape, 1)    # (1, C, TP)
    gathered = jnp.sum(jnp.where(cls == labels, conf, 0.0),
                       axis=1, keepdims=True)                   # (1, 1, TP)
    ce_ref[...] = lse - gathered

    # Smooth-L1 over positive priors (padded priors have label 0 -> masked out)
    posf = (labels > 0).astype(jnp.float32)                     # (1, 1, TP)
    loc = loc_ref[...]                                          # (1, 8, TP)
    d = loc[:, 0:4, :] - loc[:, 4:8, :]                         # (1, 4, TP)
    ad = jnp.abs(d)
    sl1 = jnp.where(ad < 1.0, 0.5 * d * d, ad - 0.5)
    per_prior = jnp.sum(sl1, axis=1, keepdims=True) * posf      # (1, 1, TP)
    lossl_ref[...] = jnp.sum(per_prior, axis=2, keepdims=True)  # (1, 1, 1)


# ----------------------------- wrapper ---------------------------------------
def _pad_last(x, target):
    pad = target - x.shape[-1]
    if pad == 0:
        return x
    widths = [(0, 0)] * (x.ndim - 1) + [(0, pad)]
    return jnp.pad(x, widths)


@jax.jit
def multibox_loss(loc_data, conf_data, priors, targets):
    B, P, C = conf_data.shape
    priors = priors[:P, :]
    variances = CFG["variance"]

    # per-sample matching / target encoding (plain JAX, f32/int32)
    loc_t, conf_t = jax.vmap(
        lambda t, l: _match(THRESHOLD, t, priors, variances, l)
    )(targets[..., :4], targets[..., 4])                        # [B,P,4], [B,P]

    # ---- lane-dense layout: P on lanes; full-P tiles when they fit ----------
    P128 = pl.cdiv(P, 128) * 128
    NT = pl.cdiv(P128, MAX_TP)                 # number of prior tiles
    TP = pl.cdiv(P128, NT * 128) * 128         # tile size (multiple of 128)
    P_pad = NT * TP

    conf_cp = _pad_last(jnp.transpose(conf_data, (0, 2, 1)), P_pad)   # [B,C,Pp]
    loc_cp = _pad_last(
        jnp.concatenate([jnp.transpose(loc_data, (0, 2, 1)),
                         jnp.transpose(loc_t, (0, 2, 1))], axis=1),
        P_pad)                                                        # [B,8,Pp]
    conft_3 = _pad_last(conf_t, P_pad)[:, None, :]                    # [B,1,Pp]

    # ---- Pallas: per-prior CE + Smooth-L1 positive partial sums -------------
    ce3, lossl_part = pl.pallas_call(
        _ce_sl1_kernel,
        out_shape=(
            jax.ShapeDtypeStruct((B, 1, P_pad), jnp.float32),
            jax.ShapeDtypeStruct((B * NT, 1, 1), jnp.float32),
        ),
        grid=(B, NT),
        in_specs=[
            pl.BlockSpec((1, C, TP), lambda b, t: (b, 0, t)),
            pl.BlockSpec((1, 1, TP), lambda b, t: (b, 0, t)),
            pl.BlockSpec((1, 8, TP), lambda b, t: (b, 0, t)),
        ],
        out_specs=(
            pl.BlockSpec((1, 1, TP), lambda b, t: (b, 0, t)),
            pl.BlockSpec((1, 1, 1), lambda b, t, NT=NT: (b * NT + t, 0, 0)),
        ),
        compiler_params=pltpu.CompilerParams(
            dimension_semantics=("parallel", "parallel")),
    )(conf_cp, conft_3, loc_cp)

    # ---- hard-negative mining (XLA): one descending sort + scatter rank -----
    ce = ce3[:, 0, :P]                                          # [B, P]
    pos = conf_t > 0                                            # [B, P]
    num_pos = jnp.sum(pos.astype(jnp.int32), axis=1, keepdims=True)

    mining = jnp.where(pos, 0.0, ce)
    order = jnp.argsort(-mining, axis=1)                        # stable desc
    rank = jnp.zeros((B, P), jnp.int32).at[
        jnp.arange(B, dtype=jnp.int32)[:, None], order].set(
        jnp.broadcast_to(jnp.arange(P, dtype=jnp.int32)[None, :], (B, P)))
    num_neg = jnp.minimum(NEGPOS_RATIO * num_pos, P - 1)
    neg = rank < num_neg
    sel = (pos | neg).astype(jnp.float32)                       # [B, P]

    # ---- losses + normalization (f32) ----------------------------------------
    loss_c = jnp.sum(ce * sel)                 # fused masked sum (no 2nd kernel)
    loss_l = jnp.sum(lossl_part)
    N = jnp.sum(num_pos).astype(jnp.float32)
    return loss_l / N, loss_c / N


# ----------------------------- pure-JAX reference (for checking) -------------
def multibox_loss_ref(loc_data, conf_data, priors, targets):
    priors = priors[:loc_data.shape[1], :]
    loc_t, conf_t = jax.vmap(
        lambda t, l: _match(THRESHOLD, t, priors, CFG["variance"], l)
    )(targets[..., :4], targets[..., 4])
    P = priors.shape[0]
    pos = conf_t > 0
    num_pos = pos.sum(axis=1, keepdims=True)
    d = loc_data - loc_t
    sl1 = jnp.where(jnp.abs(d) < 1.0, 0.5 * d * d, jnp.abs(d) - 0.5)
    loss_l = jnp.sum(sl1 * pos[..., None])
    lse = jax.scipy.special.logsumexp(conf_data, axis=2)
    gathered = jnp.take_along_axis(conf_data, conf_t[..., None], axis=2)[..., 0]
    ce = lse - gathered
    mining = jnp.where(pos, 0.0, ce)
    order = jnp.argsort(-mining, axis=1)
    rank = jnp.argsort(order, axis=1)
    num_neg = jnp.minimum(NEGPOS_RATIO * num_pos, P - 1)
    neg = rank < num_neg
    sel = pos | neg
    loss_c = jnp.sum(ce * sel)
    N = num_pos.sum().astype(jnp.float32)
    return loss_l / N, loss_c / N


if __name__ == "__main__":
    B, P, C, O = 2, 256, CFG["num_classes"], 4
    key = jax.random.PRNGKey(0)
    ks = jax.random.split(key, 7)

    # priors: center-form default boxes in [0, 1]
    cxcy = jax.random.uniform(ks[0], (P, 2), jnp.float32, 0.15, 0.85)
    wh = jax.random.uniform(ks[1], (P, 2), jnp.float32, 0.08, 0.30)
    priors = jnp.concatenate([cxcy, wh], axis=1)

    # targets: [B, O, 5] corner boxes + class label in {0..C-2}
    t_c = jax.random.uniform(ks[2], (B, O, 2), jnp.float32, 0.2, 0.8)
    t_wh = jax.random.uniform(ks[3], (B, O, 2), jnp.float32, 0.1, 0.3)
    x1y1 = jnp.clip(t_c - t_wh / 2.0, 0.0, 1.0)
    x2y2 = jnp.clip(t_c + t_wh / 2.0, 0.0, 1.0)
    labels = jax.random.randint(ks[4], (B, O), 0, C - 1).astype(jnp.float32)
    targets = jnp.concatenate([x1y1, x2y2, labels[..., None]], axis=-1)

    # network predictions
    loc_data = 0.1 * jax.random.normal(ks[5], (B, P, 4), jnp.float32)
    conf_data = jax.random.normal(ks[6], (B, P, C), jnp.float32)

    loss_l, loss_c = multibox_loss(loc_data, conf_data, priors, targets)
    jax.block_until_ready((loss_l, loss_c))

    ref_l, ref_c = multibox_loss_ref(loc_data, conf_data, priors, targets)
    assert bool(jnp.isfinite(loss_l)) and bool(jnp.isfinite(loss_c))
    assert abs(float(loss_l) - float(ref_l)) < 1e-4 * max(1.0, abs(float(ref_l)))
    assert abs(float(loss_c) - float(ref_c)) < 1e-4 * max(1.0, abs(float(ref_c)))
    print("KERNEL_OK")
</pallas_src>

<mosaic_0001>
module attributes {stable_mosaic.version = 11 : i64} {
  func.func @_ce_sl1_kernel(%arg0: i32, %arg1: i32, %arg2: memref<1x4x256xf32, #tpu.memory_space<vmem>>, %arg3: memref<1x1x256xi32, #tpu.memory_space<vmem>>, %arg4: memref<1x8x256xf32, #tpu.memory_space<vmem>>, %arg5: memref<1x1x256xf32, #tpu.memory_space<vmem>>, %arg6: memref<1x1x1xf32, #tpu.memory_space<vmem>>) attributes {dimension_semantics = [#tpu.dimension_semantics<parallel>, #tpu.dimension_semantics<parallel>], iteration_bounds = array<i64: 2, 1>, scalar_prefetch = 0 : i64, scratch_operands = 0 : i64, tpu.core_type = #tpu.core_type<tc>, window_params = [{transform_indices = @transform_0, window_bounds = array<i64: 1, 4, 256>}, {transform_indices = @transform_1, window_bounds = array<i64: 1, 1, 256>}, {transform_indices = @transform_2, window_bounds = array<i64: 1, 8, 256>}, {transform_indices = @transform_3, window_bounds = array<i64: 1, 1, 256>}, {transform_indices = @transform_4, window_bounds = array<i64: 1, 1, 1>}]} {
    %c0 = arith.constant 0 : index
    %c0_0 = arith.constant 0 : index
    %c0_1 = arith.constant 0 : index
    %0 = vector.load %arg2[%c0, %c0_0, %c0_1] : memref<1x4x256xf32, #tpu.memory_space<vmem>>, vector<1x4x256xf32>
    %c0_2 = arith.constant 0 : index
    %c0_3 = arith.constant 0 : index
    %c0_4 = arith.constant 0 : index
    %1 = vector.load %arg3[%c0_2, %c0_3, %c0_4] : memref<1x1x256xi32, #tpu.memory_space<vmem>>, vector<1x1x256xi32>
    %cst = arith.constant dense<0xFF800000> : vector<1x256xf32>
    %2 = vector.multi_reduction <maximumf>, %0, %cst [1] : vector<1x4x256xf32> to vector<1x256xf32>
    %3 = vector.shape_cast %2 : vector<1x256xf32> to vector<1x1x256xf32>
    %4 = vector.broadcast %3 : vector<1x1x256xf32> to vector<1x4x256xf32>
    %5 = arith.subf %0, %4 : vector<1x4x256xf32>
    %6 = math.exp %5 : vector<1x4x256xf32>
    %cst_5 = arith.constant dense<0.000000e+00> : vector<1x256xf32>
    %7 = vector.multi_reduction <add>, %6, %cst_5 [1] : vector<1x4x256xf32> to vector<1x256xf32>
    %8 = vector.shape_cast %7 : vector<1x256xf32> to vector<1x1x256xf32>
    %9 = math.log %8 : vector<1x1x256xf32>
    %10 = arith.addf %9, %3 : vector<1x1x256xf32>
    %11 = tpu.iota {dimensions = array<i32: 1>} : vector<1x4x256xi32>
    %12 = vector.broadcast %1 : vector<1x1x256xi32> to vector<1x4x256xi32>
    %13 = arith.cmpi eq, %11, %12 : vector<1x4x256xi32>
    %cst_6 = arith.constant 0.000000e+00 : f32
    %14 = vector.broadcast %cst_6 : f32 to vector<1x4x256xf32>
    %15 = arith.select %13, %0, %14 : vector<1x4x256xi1>, vector<1x4x256xf32>
    %cst_7 = arith.constant dense<0.000000e+00> : vector<1x256xf32>
    %16 = vector.multi_reduction <add>, %15, %cst_7 [1] : vector<1x4x256xf32> to vector<1x256xf32>
    %17 = vector.shape_cast %16 : vector<1x256xf32> to vector<1x1x256xf32>
    %18 = arith.subf %10, %17 : vector<1x1x256xf32>
    %c0_8 = arith.constant 0 : index
    %c0_9 = arith.constant 0 : index
    %c0_10 = arith.constant 0 : index
    %19 = vector.load %arg5[%c0_8, %c0_9, %c0_10] : memref<1x1x256xf32, #tpu.memory_space<vmem>>, vector<1x1x256xf32>
    tpu.vector_store %arg5[%c0_8, %c0_9, %c0_10], %18 {strides = array<i32>} : memref<1x1x256xf32, #tpu.memory_space<vmem>>, vector<1x1x256xf32>,
    %c0_i32 = arith.constant 0 : i32
    %20 = vector.broadcast %c0_i32 : i32 to vector<1x1x256xi32>
    %21 = arith.cmpi sgt, %1, %20 : vector<1x1x256xi32>
    %22 = arith.extui %21 : vector<1x1x256xi1> to vector<1x1x256xi32>
    %23 = arith.sitofp %22 : vector<1x1x256xi32> to vector<1x1x256xf32>
    %c0_11 = arith.constant 0 : index
    %c0_12 = arith.constant 0 : index
    %c0_13 = arith.constant 0 : index
    %24 = vector.load %arg4[%c0_11, %c0_12, %c0_13] : memref<1x8x256xf32, #tpu.memory_space<vmem>>, vector<1x8x256xf32>
    %25 = vector.extract_strided_slice %24 {offsets = [0, 0, 0], sizes = [1, 4, 256], strides = [1, 1, 1]} : vector<1x8x256xf32> to vector<1x4x256xf32>
    %26 = vector.extract_strided_slice %24 {offsets = [0, 4, 0], sizes = [1, 4, 256], strides = [1, 1, 1]} : vector<1x8x256xf32> to vector<1x4x256xf32>
    %27 = arith.subf %25, %26 : vector<1x4x256xf32>
    %28 = math.absf %27 : vector<1x4x256xf32>
    %cst_14 = arith.constant 1.000000e+00 : f32
    %29 = vector.broadcast %cst_14 : f32 to vector<1x4x256xf32>
    %30 = arith.cmpf olt, %28, %29 : vector<1x4x256xf32>
    %cst_15 = arith.constant 5.000000e-01 : f32
    %31 = vector.broadcast %cst_15 : f32 to vector<1x4x256xf32>
    %32 = arith.mulf %31, %27 : vector<1x4x256xf32>
    %33 = arith.mulf %32, %27 : vector<1x4x256xf32>
    %cst_16 = arith.constant 5.000000e-01 : f32
    %34 = vector.broadcast %cst_16 : f32 to vector<1x4x256xf32>
    %35 = arith.subf %28, %34 : vector<1x4x256xf32>
    %36 = arith.select %30, %33, %35 : vector<1x4x256xi1>, vector<1x4x256xf32>
    %cst_17 = arith.constant dense<0.000000e+00> : vector<1x256xf32>
    %37 = vector.multi_reduction <add>, %36, %cst_17 [1] : vector<1x4x256xf32> to vector<1x256xf32>
    %38 = vector.shape_cast %37 : vector<1x256xf32> to vector<1x1x256xf32>
    %39 = arith.mulf %38, %23 : vector<1x1x256xf32>
    %cst_18 = arith.constant dense<0.000000e+00> : vector<1x1xf32>
    %40 = vector.multi_reduction <add>, %39, %cst_18 [2] : vector<1x1x256xf32> to vector<1x1xf32>
    %41 = vector.shape_cast %40 : vector<1x1xf32> to vector<1x1x1xf32>
    %c0_19 = arith.constant 0 : index
    %c0_20 = arith.constant 0 : index
    %c0_21 = arith.constant 0 : index
    %42 = vector.load %arg6[%c0_19, %c0_20, %c0_21] : memref<1x1x1xf32, #tpu.memory_space<vmem>>, vector<1x1x1xf32>
    tpu.vector_store %arg6[%c0_19, %c0_20, %c0_21], %41 {strides = array<i32>} : memref<1x1x1xf32, #tpu.memory_space<vmem>>, vector<1x1x1xf32>,
    return
  }
  func.func @transform_0(%arg0: i32, %arg1: i32) -> (i32, i32, i32) {
    %c0_i32 = arith.constant 0 : i32
    %c0_i32_0 = arith.constant 0 : i32
    return %arg0, %c0_i32, %arg1 : i32, i32, i32
  }
  func.func @transform_1(%arg0: i32, %arg1: i32) -> (i32, i32, i32) {
    %c0_i32 = arith.constant 0 : i32
    %c0_i32_0 = arith.constant 0 : i32
    return %arg0, %c0_i32, %arg1 : i32, i32, i32
  }
  func.func @transform_2(%arg0: i32, %arg1: i32) -> (i32, i32, i32) {
    %c0_i32 = arith.constant 0 : i32
    %c0_i32_0 = arith.constant 0 : i32
    return %arg0, %c0_i32, %arg1 : i32, i32, i32
  }
  func.func @transform_3(%arg0: i32, %arg1: i32) -> (i32, i32, i32) {
    %c0_i32 = arith.constant 0 : i32
    %c0_i32_0 = arith.constant 0 : i32
    return %arg0, %c0_i32, %arg1 : i32, i32, i32
  }
  func.func @transform_4(%arg0: i32, %arg1: i32) -> (i32, i32, i32) {
    %c1_i32 = arith.constant 1 : i32
    %0 = arith.muli %arg0, %c1_i32 : i32
    %1 = arith.addi %0, %arg1 : i32
    %c0_i32 = arith.constant 0 : i32
    %c0_i32_0 = arith.constant 0 : i32
    %c0_i32_1 = arith.constant 0 : i32
    return %1, %c0_i32, %c0_i32_0 : i32, i32, i32
  }
}

</mosaic_0001>

<bundles_post_ra>
// kernel: multibox_loss.1
= control target key start
LH: loop header
LB: loop body
LE: loop exit
PB: predicated region body
PF: predicated region fallthrough
CT: control target
= control target key end

     0   :  { %s709_s15 = smov 0   ;;  %s711_s16 = smov 0   ;;  %s798_s0 = inlined_call_operand.vmem [shape: f32[2,4,256], index: 0, kind: input, shape index: {}]   ;;  %s799_s1 = inlined_call_operand.vmem [shape: s32[2,1,256], index: 1, kind: input, shape index: {}]   ;;  %s800_s2 = inlined_call_operand.vmem [shape: f32[2,8,256], index: 2, kind: input, shape index: {}]   ;;  %s801_s3 = inlined_call_operand.vmem [shape: f32[2,1,256], index: 3, kind: output, shape index: {0}]   ;;  %s802_s4 = inlined_call_operand.vmem [shape: f32[2,1,1], index: 4, kind: output, shape index: {1}]  }
   0x1   :  { %s713_s17 = smov 0  }
   0x2 LB: > { %s27_s18 = sadd.s32 1, %s677_s16  ;;  %p614_p0 = scmp.ge.s32.totalorder %s681_s17, 1  ;;  %s681_s17 = sphi %s713_s17, %s15_s17   ;;  %s677_s16 = sphi %s711_s16, %s808_s16   ;;  %s673_s15 = sphi %s709_s15, %s807_s15  }
   0x3   : > { %p29_p1 = scmp.ge.s32.totalorder %s27_s18, 2  ;;  %p221_p2 = scmp.lt.s32.totalorder %s681_s17, 3 }
   0x5   : > { %s810_s18 = smov (%p29_p1, %s27_s18), 0  ;;  %p222_p3 = pnand %p614_p0, %p221_p2 }
   0x6   : > { %p276_p4 = scmp.lt.s32.totalorder (!%p222_p3), %s673_s15, 1 }
   0x7   : > { %225 = sbr.rel (%p222_p3) target bundleno = 162 (0xa2), region = 32 }
   0xc   : > { %s812_s15 = smov (!%p276_p4, %s673_s15), 1  ;;  %vm326_vm0 = vcmask 1043456   ;;  %v683_v44 = vmov 0.0   ;;  %vm407_vm4 = vcmask 1040384   ;;  %vm466_vm8 = vcmask 0  }
   0xd   : > { %s626_s19 = sshll.u32 %s812_s15, 3  ;;  %s627_s23 = sshll.u32 %s812_s15, 4 }
   0xe   : > { %s283_s22 = scalar_lea.vmem %s798_s0, %s626_s19  ;;  %s302_s26 = scalar_lea.vmem %s800_s2, %s627_s23 }
   0xf   : > { %v734_v0 = vld [vmem:[%s283_s22] sm:$0xff]  ;;  %v419_v2 = vld [vmem:[%s302_s26 + $0x8] sm:$0xff]  ;;  %s617_s27 = sshll.u32 %s812_s15, 1  ;;  %s316_s10 = scalar_lea.vmem %s802_s4, %s812_s15 }
  0x10   : > { %321 = vst [vmem:[#allocation1] ss:$2 sm:$0xff] %v734_v0  ;;  %v418_v1 = vld [vmem:[%s302_s26] sm:$0xff]  ;;  %v423_v4 = vrot.slane %v419_v2, 4  ;;  %s292_s30 = scalar_lea.vmem %s799_s1, %s617_s27  ;;  %s311_s7 = scalar_lea.vmem %s801_s3, %s617_s27 }
  0x11   : > { %v422_v3 = vrot.slane %v418_v1, 4  ;;  %v319_v27 = vld [vmem:[%s292_s30] sm:$0x3] }
  0x12   : > { %v427_v6 = vsub.f32 %v419_v2, %v423_v4  ;;  %vm415_vm3 = vcmp.gt.s32.totalorder %v319_v27, 0 }
  0x13   : > { %v426_v5 = vsub.f32 %v418_v1, %v422_v3  ;;  %v621_v45 = vsel %vm415_vm3, 1.0, %v683_v44  ;;  %v375_v1 = vlaneseq }
  0x14   : > { %v429_v8 = vand.u32 2147483647, %v427_v6  ;;  %v433_v10 = vmul.f32 0.5, %v427_v6  ;;  %v455_v51 = vperm.slane %v621_v45, 0  ;;  %v456_v52 = vperm.slane %v621_v45, 1 }
  0x15   : > { %v428_v7 = vand.u32 2147483647, %v426_v5  ;;  %v432_v9 = vmul.f32 0.5, %v426_v5  ;;  %vm412_vm7 = vcmp.lt.s32.totalorder %v375_v1, 256 }
  0x16   : > { %vm747_vm2 = vcmp.lt.f32.partialorder %v429_v8, 1.0  ;;  %v435_v20 = vmul.f32 %v433_v10, %v427_v6  ;;  %v623_v22 = vadd.f32 -0.5, %v429_v8  ;;  %v377_v6 = vperm.slane %v319_v27, 0 }
  0x17   : > { %v322_v11 = vld.sshfl [vmem:[#allocation1] sm:$0xff pattern:$0x75316420]  ;;  %v323_v12 = vld.sshfl [vmem:[#allocation1 + $0x8] sm:$0xff pattern:$0x75316420]  ;;  %v434_v19 = vmul.f32 %v432_v9, %v426_v5 }
  0x18   : > { %v327_v13 = vsel %vm326_vm0, %v322_v11, -inf  ;;  %v334_v14 = vsel %vm326_vm0, %v323_v12, -inf  ;;  %vm743_vm1 = vcmp.lt.f32.partialorder %v428_v7, 1.0  ;;  %v622_v21 = vadd.f32 -0.5, %v428_v7 }
  0x19   : > { %v328_v17 = vrot.slane %v327_v13, 4  ;;  %v335_v18 = vrot.slane %v334_v14, 4  ;;  %v439_v26 = vsel %vm747_vm2, %v435_v20, %v623_v22  ;;  %v376_v9 = vshrl.u32 %v375_v1, 7 }
  0x1a   : > { %v438_v25 = vsel %vm743_vm1, %v434_v19, %v622_v21  ;;  %v447_v31 = vsel %vm326_vm0, %v439_v26, 0.0  ;;  %v378_v10 = vperm.slane %v319_v27, 1 }
  0x1b   : > { %v329_v23 = vmax.f32 %v327_v13, %v328_v17  ;;  %v336_v24 = vmax.f32 %v334_v14, %v335_v18  ;;  %v440_v30 = vsel %vm326_vm0, %v438_v25, 0.0  ;;  %v448_v33 = vrot.slane %v447_v31, 4 }
  0x1c   : > { %v441_v32 = vrot.slane %v440_v30, 4  ;;  %vm379_vm5 = vcmp.eq.s32.totalorder %v376_v9, %v377_v6  ;;  %vm380_vm6 = vcmp.eq.s32.totalorder %v376_v9, %v378_v10 }
  0x1d   : > { %v330_v28 = vrot.slane %v329_v23, 2  ;;  %v337_v29 = vrot.slane %v336_v24, 2  ;;  %v449_v37 = vadd.f32 %v448_v33, %v447_v31 }
  0x1e   : > { %v442_v36 = vadd.f32 %v441_v32, %v440_v30 }
  0x1f   : > { %v331_v34 = vmax.f32 %v329_v23, %v330_v28  ;;  %v338_v35 = vmax.f32 %v336_v24, %v337_v29  ;;  %v450_v41 = vrot.slane %v449_v37, 2 }
  0x20   : > { %v443_v40 = vrot.slane %v442_v36, 2 }
  0x21   : > { %v332_v38 = vrot.slane %v331_v34, 1  ;;  %v339_v39 = vrot.slane %v338_v35, 1  ;;  %v451_v47 = vadd.f32 %v450_v41, %v449_v37 }
  0x22   : > { %v444_v46 = vadd.f32 %v443_v40, %v442_v36 }
  0x23   : > { %v762_v42 = vmax.f32 %v331_v34, %v332_v38  ;;  %v764_v43 = vmax.f32 %v338_v35, %v339_v39  ;;  %v452_v50 = vrot.slane %v451_v47, 1 }
  0x24   : > { %v445_v49 = vrot.slane %v444_v46, 1 }
  0x25   : > { %v343_v48 = vrot.slane %v764_v43, 4  ;;  %v453_v56 = vadd.f32 %v452_v50, %v451_v47 }
  0x26   : > { %v446_v55 = vadd.f32 %v445_v49, %v444_v46 }
  0x27   : > { %v344_v53 = vsel %vm326_vm0, %v762_v42, %v343_v48  ;;  %v460_v59 = vmul.f32 %v456_v52, %v453_v56 }
  0x28   : > { %v346_v54 = vsub.f32 %v734_v0, %v344_v53  ;;  %v459_v58 = vmul.f32 %v455_v51, %v446_v55 }
  0x29   : > { %v462_v61 = vsel %vm407_vm4, %v460_v59, 0.0 }
  0x2a   : > { %v347_v57 = vmul.f32 1.442695, %v346_v54  ;;  %v461_v60 = vsel %vm407_vm4, %v459_v58, 0.0 }
  0x2b   : > { %v463_v62 = vadd.f32 %v462_v61, %v461_v60 }
  0x2c   : > { %653 = vpow2.f32 %v347_v57 }
  0x2d   : > { %464 = vadd.xlane.f32.xlu0 %v463_v62 }
  0x32   : > { %v654_v63 = vpop.eup %653 }
  0x33   : > { %350 = vst [vmem:[#allocation1] ss:$2 sm:$0xff] %v654_v63 }
  0x3a   : > { %v351_v2 = vld.sshfl [vmem:[#allocation1] sm:$0xff pattern:$0x75316420]  ;;  %v352_v3 = vld.sshfl [vmem:[#allocation1 + $0x8] sm:$0xff pattern:$0x75316420] }
  0x3b   : > { %v355_v4 = vsel %vm326_vm0, %v351_v2, 0.0  ;;  %v362_v5 = vsel %vm326_vm0, %v352_v3, 0.0  ;;  %381 = vst [vmem:[#allocation1] ss:$2 sm:$0xff] %v734_v0 }
  0x3c   : > { %v356_v7 = vrot.slane %v355_v4, 4  ;;  %v363_v8 = vrot.slane %v362_v5, 4 }
  0x3e   : > { %v357_v11 = vadd.f32 %v356_v7, %v355_v4  ;;  %v364_v12 = vadd.f32 %v363_v8, %v362_v5 }
  0x40   : > { %v358_v13 = vrot.slane %v357_v11, 2  ;;  %v365_v14 = vrot.slane %v364_v12, 2 }
  0x42   : > { %v359_v15 = vadd.f32 %v358_v13, %v357_v11  ;;  %v366_v16 = vadd.f32 %v365_v14, %v364_v12  ;;  %v382_v17 = vld.sshfl [vmem:[#allocation1] sm:$0xff pattern:$0x75316420]  ;;  %v383_v18 = vld.sshfl [vmem:[#allocation1 + $0x8] sm:$0xff pattern:$0x75316420] }
  0x43   : > { %v386_v19 = vsel %vm379_vm5, %v382_v17, 0.0  ;;  %v387_v20 = vsel %vm380_vm6, %v383_v18, 0.0 }
  0x44   : > { %v360_v21 = vrot.slane %v359_v15, 1  ;;  %v367_v22 = vrot.slane %v366_v16, 1  ;;  %v388_v0 = vsel %vm326_vm0, %v386_v19, 0.0  ;;  %v395_v23 = vsel %vm326_vm0, %v387_v20, 0.0 }
  0x45   : > { %v389_v24 = vrot.slane %v388_v0, 4  ;;  %v396_v25 = vrot.slane %v395_v23, 4 }
  0x46   : > { %v361_v26 = vadd.f32 %v360_v21, %v359_v15  ;;  %v368_v27 = vadd.f32 %v367_v22, %v366_v16 }
  0x47   : > { %v390_v28 = vadd.f32 %v389_v24, %v388_v0  ;;  %v397_v29 = vadd.f32 %v396_v25, %v395_v23 }
  0x48   : > { %655 = vlog2.f32 %v361_v26 }
  0x49   : > { %657 = vlog2.f32 %v368_v27  ;;  %v391_v30 = vrot.slane %v390_v28, 2  ;;  %v398_v31 = vrot.slane %v397_v29, 2 }
  0x4b   : > { %v392_v32 = vadd.f32 %v391_v30, %v390_v28  ;;  %v399_v33 = vadd.f32 %v398_v31, %v397_v29 }
  0x4d   : > { %v393_v34 = vrot.slane %v392_v32, 1  ;;  %v400_v35 = vrot.slane %v399_v33, 1 }
  0x4e   : > { %v656_v36 = vpop.eup %655 }
  0x4f   : > { %v658_v37 = vpop.eup %657  ;;  %v370_v38 = vmul.f32 0.6931472, %v656_v36  ;;  %v394_v40 = vadd.f32 %v393_v34, %v392_v32  ;;  %v401_v41 = vadd.f32 %v400_v35, %v399_v33 }
  0x50   : > { %v372_v39 = vmul.f32 0.6931472, %v658_v37 }
  0x51   : > { %v373_v44 = vadd.f32 %v370_v38, %v762_v42 }
  0x52   : > { %v374_v45 = vadd.f32 %v372_v39, %v764_v43 }
  0x53   : > { %v402_v46 = vsub.f32 %v373_v44, %v394_v40 }
  0x54   : > { %v403_v47 = vsub.f32 %v374_v45, %v401_v41 }
  0x56   : > { %v406_v48 = vrot.slane %v403_v47, 7 }
  0x58   : > { %v408_v49 = vsel %vm407_vm4, %v402_v46, %v406_v48 }
  0x59   : > { %414 = vst.msk [vmem:[%s311_s7] sm:$0x3] %vm412_vm7, %v408_v49 }
  0xa0   : > { %v465_v42 = vpop.xlane.xlu0 %464 }
  0xa1   : > { %467 = vst.msk [vmem:[%s316_s10] sm:$0x1] %vm466_vm8, %v465_v42 }
  0xa2 PF: > { %s15_s17 = sadd.s32 1, %s681_s17   ;;  %s807_s15 = smov %s677_s16 }
  0xa3   : > { %p12_p5 = scmp.ge.s32.totalorder %s15_s17, 4   ;;  %s808_s16 = smov %s810_s18 }
  0xa5   :  { %14 = sbr.rel (!%p12_p5) target bundleno = 2 (0x2), region = 80 }

</bundles_post_ra>
